<compile_context>
chip_gen: v7x
topology: tpu7x:2x2x1
jax: 0.10.0
libtpu: 0.0.40
codegen_flags: <defaults>
</compile_context>

<pallas_src>
from functools import lru_cache, partial

import numpy as np
from numpy import sin, cos, tan, pi, arcsin, arctan

import jax
import jax.numpy as jnp
from jax.experimental import pallas as pl
from jax.experimental.pallas import tpu as pltpu


# ----------------------------------------------------------------------------
# Host-side (glue): reproduce the numpy grid-coordinate generation exactly.
# ----------------------------------------------------------------------------
def _get_xy(delta_phi, delta_theta):
    return np.array([
        [(-tan(delta_theta), 1 / cos(delta_theta) * tan(delta_phi)),
         (0, tan(delta_phi)),
         (tan(delta_theta), 1 / cos(delta_theta) * tan(delta_phi))],
        [(-tan(delta_theta), 0), (1, 1), (tan(delta_theta), 0)],
        [(-tan(delta_theta), -1 / cos(delta_theta) * tan(delta_phi)),
         (0, -tan(delta_phi)),
         (tan(delta_theta), -1 / cos(delta_theta) * tan(delta_phi))],
    ])


def _cal_index(h, w, img_r, img_c):
    phi = -((img_r + 0.5) / h * pi - pi / 2)
    theta = (img_c + 0.5) / w * 2 * pi - pi
    delta_phi = pi / h
    delta_theta = 2 * pi / w
    xys = _get_xy(delta_phi, delta_theta)
    x = xys[..., 0]
    y = xys[..., 1]
    with np.errstate(divide="ignore", invalid="ignore"):
        rho = np.sqrt(x ** 2 + y ** 2)
        v = arctan(rho)
        new_phi = arcsin(cos(v) * sin(phi) + y * sin(v) * cos(phi) / rho)
        new_theta = theta + arctan(
            x * sin(v) / (rho * cos(phi) * cos(v) - y * sin(phi) * sin(v)))
    new_r = (-new_phi + pi / 2) * h / pi - 0.5
    new_c = (new_theta + pi) * w / 2 / pi - 0.5
    new_c = (new_c + w) % w
    new_result = np.stack([new_r, new_c], axis=-1)
    new_result[1, 1] = (img_r, img_c)
    return new_result


def _gen_filters_coordinates(h, w, stride):
    co = np.array([[_cal_index(h, w, i, j) for j in range(0, w, stride)]
                   for i in range(0, h, stride)])
    return np.ascontiguousarray(co.transpose([4, 0, 1, 2, 3]))


def _gen_grid_coordinates(h, w, stride=1):
    coordinates = _gen_filters_coordinates(h, w, stride).copy()
    coordinates[0] = coordinates[0] * 2 / h - 1
    coordinates[1] = coordinates[1] * 2 / w - 1
    coordinates = coordinates[::-1]
    coordinates = coordinates.transpose(1, 3, 2, 4, 0)
    sz = coordinates.shape
    coordinates = coordinates.reshape(1, sz[0] * sz[1], sz[2] * sz[3], sz[4])
    return coordinates.copy()


@lru_cache(maxsize=None)
def _build_sample_pool_matrix(h, w, stride=1):
    """Fold grid_sample(bilinear, zero-pad, align_corners=False) + AvgPool2d(3,3)
    into one (Ho*Wo, H*W) weight matrix. Cached (host numpy) per (h, w, stride)."""
    grid = _gen_grid_coordinates(h, w, stride)[0]  # (3*Ho, 3*Wo, 2), [...,0]=x,[...,1]=y
    hg, wg, _ = grid.shape
    ho, wo = hg // 3, wg // 3
    gx = grid[..., 0]
    gy = grid[..., 1]
    # unnormalize (align_corners=False, PyTorch default)
    ix = ((gx + 1.0) * w - 1.0) / 2.0
    iy = ((gy + 1.0) * h - 1.0) / 2.0
    x0 = np.floor(ix).astype(np.int64)
    y0 = np.floor(iy).astype(np.int64)
    x1 = x0 + 1
    y1 = y0 + 1
    wx1 = ix - x0
    wx0 = 1.0 - wx1
    wy1 = iy - y0
    wy0 = 1.0 - wy1

    mat = np.zeros((ho * wo, h * w), dtype=np.float64)
    for gi in range(hg):
        for gj in range(wg):
            out_idx = (gi // 3) * wo + (gj // 3)
            corners = (
                (y0[gi, gj], x0[gi, gj], wy0[gi, gj] * wx0[gi, gj]),
                (y0[gi, gj], x1[gi, gj], wy0[gi, gj] * wx1[gi, gj]),
                (y1[gi, gj], x0[gi, gj], wy1[gi, gj] * wx0[gi, gj]),
                (y1[gi, gj], x1[gi, gj], wy1[gi, gj] * wx1[gi, gj]),
            )
            for yy, xx, wgt in corners:
                if 0 <= yy < h and 0 <= xx < w:  # zero padding -> drop OOB taps
                    mat[out_idx, yy * w + xx] += wgt / 9.0
    return mat.astype(np.float32)


# ----------------------------------------------------------------------------
# Tiling helpers + host-side (numpy) caches for the padded weight and CSR data.
# ----------------------------------------------------------------------------
def _round_up(a, b):
    return (a + b - 1) // b * b


def _cdiv(a, b):
    return -(-a // b)


def _balanced_tile(dim, cap, quantum):
    """Largest tile <= ~cap that splits `dim` into equal-ish pieces, rounded
    up to `quantum` (bounds pad waste to < one quantum per tile)."""
    nt = max(1, _cdiv(dim, cap))
    return _round_up(_cdiv(dim, nt), quantum)


def _vmem_bytes(tm, tk, tn, a_bytes, b_bytes, o_bytes, multi_k):
    est = 2 * (tm * tk * a_bytes + tk * tn * b_bytes + tm * tn * o_bytes)
    if multi_k:
        est += tm * tn * 4  # f32 accumulator scratch
    return est


@lru_cache(maxsize=None)
def _cached_bt(h, w, stride, kp, np_):
    """Pre-transposed, zero-padded (kp, np_) weight matrix (host numpy f32)."""
    mat = _build_sample_pool_matrix(h, w, stride)     # (Ho*Wo, H*W)
    bt = np.zeros((kp, np_), dtype=np.float32)        # padded rows/cols = 0
    bt[:h * w, :mat.shape[0]] = mat.T
    return bt


@lru_cache(maxsize=None)
def _cached_csr(h, w, stride, kp, np_, tk, tn):
    """Compacted per-output-column-tile lists of nonzero K-tile indices.

    Returns (kk_idx flat int32[gn*max_nnz], count int32[gn], max_nnz).  Ragged
    tails are padded with the *last valid* block index so the pipeliner keeps
    the resident tile (no extra DMA) while pl.when(s < count[j]) skips compute.
    """
    bt = _cached_bt(h, w, stride, kp, np_)
    gn, gk = np_ // tn, kp // tk
    lists = []
    count = np.zeros((gn,), dtype=np.int32)
    for j in range(gn):
        nz = [kk for kk in range(gk)
              if np.any(bt[kk * tk:(kk + 1) * tk, j * tn:(j + 1) * tn] != 0.0)]
        count[j] = len(nz)
        lists.append(nz)
    max_nnz = max(1, int(count.max()))
    kk_idx = np.zeros((gn, max_nnz), dtype=np.int32)
    for j, nz in enumerate(lists):
        if nz:
            kk_idx[j, :len(nz)] = nz
            kk_idx[j, len(nz):] = nz[-1]
    return kk_idx.reshape(-1), count, max_nnz


# ----------------------------------------------------------------------------
# Pallas kernels: tiled matmul (N*C, H*W) @ (H*W, Ho*Wo) on the MXU.
# A tiles are loaded in their native dtype and cast in-kernel (VPU, hidden).
# ----------------------------------------------------------------------------
def _mm_kernel_single(a_ref, b_ref, o_ref):
    # Whole reduction in one K tile: no accumulator, no control flow.
    o_ref[...] = jnp.dot(a_ref[...].astype(b_ref.dtype), b_ref[...],
                         preferred_element_type=jnp.float32).astype(o_ref.dtype)


def _mm_kernel_sparse(kk_idx_ref, count_ref, a_ref, b_ref, o_ref, acc_ref):
    j = pl.program_id(1)
    s = pl.program_id(2)
    ns = pl.num_programs(2)

    @pl.when(s == 0)
    def _():
        acc_ref[...] = jnp.zeros_like(acc_ref)

    # Ragged tail of the compacted nonzero-K-tile list: skip the matmul.  The
    # index_map already pinned the block index to the last valid tile, so the
    # skipped steps also do zero DMA.
    @pl.when(s < count_ref[j])
    def _():
        acc_ref[...] += jnp.dot(a_ref[...].astype(b_ref.dtype), b_ref[...],
                                preferred_element_type=jnp.float32)

    @pl.when(s == ns - 1)
    def _():
        o_ref[...] = acc_ref[...].astype(o_ref.dtype)


def _compiler_params(sems, vmem_limit):
    if vmem_limit:
        return pltpu.CompilerParams(dimension_semantics=sems,
                                    vmem_limit_bytes=int(vmem_limit))
    return pltpu.CompilerParams(dimension_semantics=sems)


# ----------------------------------------------------------------------------
# Jitted device path: pad -> pallas matmul -> slice/reshape, all in one jit so
# the glue fuses instead of making separate HBM passes.
# ----------------------------------------------------------------------------
@partial(jax.jit, static_argnames=("cfg",))
def _sphere_pool_device(x, b, kk_idx, count, *, cfg):
    (ho, wo, tm, tn, tk, mp, kp, np_, max_nnz, multi_k, vmem_limit) = cfg
    n, c, h, w = x.shape
    m, k, nn = n * c, h * w, ho * wo

    a = x.reshape(m, k)
    a = jnp.pad(a, ((0, mp - m), (0, kp - k)))   # K-pad rows of B are zero

    gm, gn = mp // tm, np_ // tn
    out_shape = jax.ShapeDtypeStruct((mp, np_), x.dtype)

    if not multi_k:
        out = pl.pallas_call(
            _mm_kernel_single,
            out_shape=out_shape,
            grid_spec=pltpu.PrefetchScalarGridSpec(
                num_scalar_prefetch=0,
                grid=(gm, gn),
                in_specs=[
                    pl.BlockSpec((tm, tk), lambda i, j: (i, 0)),
                    pl.BlockSpec((tk, tn), lambda i, j: (0, j)),
                ],
                out_specs=pl.BlockSpec((tm, tn), lambda i, j: (i, j)),
            ),
            compiler_params=_compiler_params(("parallel", "parallel"),
                                             vmem_limit),
        )(a, b)
    else:
        # Compacted block-sparse reduction: the K grid axis enumerates only
        # the nonzero K tiles (per output column tile), looked up from SMEM.
        def a_map(i, j, s, kk_idx_ref, count_ref):
            return (i, kk_idx_ref[j * max_nnz + s])

        def b_map(i, j, s, kk_idx_ref, count_ref):
            return (kk_idx_ref[j * max_nnz + s], j)

        def o_map(i, j, s, kk_idx_ref, count_ref):
            return (i, j)

        out = pl.pallas_call(
            _mm_kernel_sparse,
            out_shape=out_shape,
            grid_spec=pltpu.PrefetchScalarGridSpec(
                num_scalar_prefetch=2,
                grid=(gm, gn, max_nnz),
                in_specs=[
                    pl.BlockSpec((tm, tk), a_map),
                    pl.BlockSpec((tk, tn), b_map),
                ],
                out_specs=pl.BlockSpec((tm, tn), o_map),
                scratch_shapes=[pltpu.VMEM((tm, tn), jnp.float32)],
            ),
            compiler_params=_compiler_params(
                ("parallel", "parallel", "arbitrary"), vmem_limit),
        )(kk_idx, count, a, b)

    return out[:m, :nn].reshape(n, c, ho, wo)


# ----------------------------------------------------------------------------
# Module-equivalent wrapper.
# ----------------------------------------------------------------------------
def sphere_avg_pool2d(x, stride=1, *, compute_dtype=jnp.bfloat16,
                      max_tm=512, max_tn=512, max_tk=1024):
    """x: (N, C, H, W) NCHW. Returns (N, C, ceil(H/stride), ceil(W/stride)),
    same dtype as x. Matmul runs in `compute_dtype` with f32 accumulation."""
    n, c, h, w = x.shape
    ho = -(-h // stride)
    wo = -(-w // stride)
    m, k, nn = n * c, h * w, ho * wo

    a_bytes = jnp.dtype(x.dtype).itemsize
    b_bytes = jnp.dtype(compute_dtype).itemsize
    o_bytes = a_bytes                      # kernel emits x.dtype directly

    # --- Tile selection -----------------------------------------------------
    # Balanced tiles (bounded pad waste), M rounded to the sublane group of the
    # *input* dtype (A is loaded in native dtype and cast in-kernel).
    sub = max(8, 32 // a_bytes)
    tm = _balanced_tile(m, max_tm, sub)
    mp = _round_up(m, tm)
    gm = mp // tm

    tn = _balanced_tile(nn, max_tn, 128)   # lane-dense stores
    np_ = _round_up(nn, tn)
    gn = np_ // tn
    # v7x has 2 TensorCores: make sure at least one parallel axis has >= 2
    # grid points when possible (split N; each core then holds half of B).
    if gm * gn == 1 and nn > 128:
        tn_half = _round_up(_cdiv(nn, 2), 128)
        if tn_half < tn:
            tn = tn_half
            np_ = _round_up(nn, tn)
            gn = np_ // tn

    # Prefer a single K tile (no accumulator / control flow, B column-panel
    # resident) whenever the whole reduction fits a conservative VMEM budget
    # that is safe even under v5e's 16 MiB default scoped VMEM.
    tk_full = _round_up(k, 128)
    if (tk_full <= max_tk and
            _vmem_bytes(tm, tk_full, tn, a_bytes, b_bytes, o_bytes, False)
            <= (12 << 20)):
        tk = tk_full
    else:
        tk = _balanced_tile(k, max_tk, 128)
    kp = _round_up(k, tk)
    gk = kp // tk
    multi_k = gk > 1

    est = _vmem_bytes(tm, tk, tn, a_bytes, b_bytes, o_bytes, multi_k)
    vmem_limit = 0
    if est > (14 << 20):                   # only if caller raised the caps
        vmem_limit = min(est + (4 << 20), 48 << 20)   # v7x (64 MiB) safe

    # --- Host-cached weight + CSR metadata, transferred per call ------------
    bt = _cached_bt(h, w, stride, kp, np_)
    b_dev = jnp.asarray(bt, dtype=compute_dtype)
    if multi_k:
        kk_idx_np, count_np, max_nnz = _cached_csr(h, w, stride, kp, np_, tk, tn)
        kk_idx = jnp.asarray(kk_idx_np)
        count = jnp.asarray(count_np)
    else:
        kk_idx, count, max_nnz = None, None, 1

    cfg = (ho, wo, tm, tn, tk, mp, kp, np_, max_nnz, multi_k, vmem_limit)
    return _sphere_pool_device(x, b_dev, kk_idx, count, cfg=cfg)


if __name__ == "__main__":
    key = jax.random.PRNGKey(0)
    x = jax.random.normal(key, (2, 4, 16, 16), dtype=jnp.float32)

    # Default path (single K tile, no accumulator; gn split to 2 for v7x).
    out = jax.block_until_ready(sphere_avg_pool2d(x, stride=1))
    assert out.shape == (2, 4, 16, 16), out.shape
    assert out.dtype == x.dtype

    # f32 plain-JAX reference using the same folded weight matrix
    # (bf16 operands in the kernel -> loose tolerance).
    wmat = jnp.asarray(_build_sample_pool_matrix(16, 16, 1))
    ref = (x.reshape(8, 256) @ wmat.T).reshape(2, 4, 16, 16)
    assert jnp.allclose(out, ref, atol=3e-2, rtol=3e-2), \
        float(jnp.max(jnp.abs(out - ref)))

    # Exercise the compacted block-sparse multi-K accumulation path.
    out2 = jax.block_until_ready(sphere_avg_pool2d(x, stride=1, max_tk=128))
    assert jnp.allclose(out2, ref, atol=3e-2, rtol=3e-2), \
        float(jnp.max(jnp.abs(out2 - ref)))

    # stride=2 path (different output spatial size).
    out3 = jax.block_until_ready(sphere_avg_pool2d(x, stride=2))
    assert out3.shape == (2, 4, 8, 8), out3.shape
    wmat2 = jnp.asarray(_build_sample_pool_matrix(16, 16, 2))
    ref3 = (x.reshape(8, 256) @ wmat2.T).reshape(2, 4, 8, 8)
    assert jnp.allclose(out3, ref3, atol=3e-2, rtol=3e-2), \
        float(jnp.max(jnp.abs(out3 - ref3)))

    print("KERNEL_OK")
</pallas_src>

<mosaic_0001>
module attributes {stable_mosaic.version = 11 : i64} {
  func.func @_mm_kernel_single(%arg0: i32, %arg1: i32, %arg2: memref<8x256xf32, #tpu.memory_space<vmem>>, %arg3: memref<256x128xbf16, #tpu.memory_space<vmem>>, %arg4: memref<8x128xf32, #tpu.memory_space<vmem>>) attributes {dimension_semantics = [#tpu.dimension_semantics<parallel>, #tpu.dimension_semantics<parallel>], iteration_bounds = array<i64: 1, 2>, scalar_prefetch = 0 : i64, scratch_operands = 0 : i64, tpu.core_type = #tpu.core_type<tc>, window_params = [{transform_indices = @transform_0, window_bounds = array<i64: 8, 256>}, {transform_indices = @transform_1, window_bounds = array<i64: 256, 128>}, {transform_indices = @transform_2, window_bounds = array<i64: 8, 128>}]} {
    %c0 = arith.constant 0 : index
    %c0_0 = arith.constant 0 : index
    %0 = vector.load %arg2[%c0, %c0_0] : memref<8x256xf32, #tpu.memory_space<vmem>>, vector<8x256xf32>
    %1 = arith.truncf %0 : vector<8x256xf32> to vector<8x256xbf16>
    %c0_1 = arith.constant 0 : index
    %c0_2 = arith.constant 0 : index
    %2 = vector.load %arg3[%c0_1, %c0_2] : memref<256x128xbf16, #tpu.memory_space<vmem>>, vector<256x128xbf16>
    %cst = arith.constant dense<0.000000e+00> : vector<8x128xf32>
    %3 = tpu.matmul %1, %2, %cst {dimension_numbers = #tpu.dot_dimension_numbers<[1], [0], [0], [1], [0, 0, 1, 1], [], []>} : vector<8x256xbf16>, vector<256x128xbf16>, vector<8x128xf32> -> vector<8x128xf32>
    %c0_3 = arith.constant 0 : index
    %c0_4 = arith.constant 0 : index
    %4 = vector.load %arg4[%c0_3, %c0_4] : memref<8x128xf32, #tpu.memory_space<vmem>>, vector<8x128xf32>
    tpu.vector_store %arg4[%c0_3, %c0_4], %3 {strides = array<i32>} : memref<8x128xf32, #tpu.memory_space<vmem>>, vector<8x128xf32>,
    return
  }
  func.func @transform_0(%arg0: i32, %arg1: i32) -> (i32, i32) {
    %c0_i32 = arith.constant 0 : i32
    %c0_i32_0 = arith.constant 0 : i32
    return %arg0, %c0_i32 : i32, i32
  }
  func.func @transform_1(%arg0: i32, %arg1: i32) -> (i32, i32) {
    %c0_i32 = arith.constant 0 : i32
    %c0_i32_0 = arith.constant 0 : i32
    return %c0_i32, %arg1 : i32, i32
  }
  func.func @transform_2(%arg0: i32, %arg1: i32) -> (i32, i32) {
    %c0_i32 = arith.constant 0 : i32
    return %arg0, %arg1 : i32, i32
  }
}

</mosaic_0001>

<bundles_post_ra>
// kernel: _sphere_pool_device.1
= control target key start
LH: loop header
LB: loop body
LE: loop exit
PB: predicated region body
PF: predicated region fallthrough
CT: control target
= control target key end

     0   :  { %7 = vsyncpa [#allocation3], 0  ;;  %s856_s0 = inlined_call_operand.vmem [shape: f32[8,256], index: 0, kind: input, shape index: {}]   ;;  %s857_s1 = inlined_call_operand.hbm [shape: bf16[256,256], index: 1, kind: input, shape index: {}]   ;;  %s858_s2 = inlined_call_operand.vmem [shape: f32[8,256], index: 2, kind: output, shape index: {}]  }
   0x1   :  { %9 = vsyncpa [#allocation3 + $0x1], 0  ;;  %s706_s9 = smov 0   ;;  %s708_s10 = smov 0  }
   0x2   :  { %s710_s11 = smov 0   ;;  %s712_s12 = smov 0  }
   0x3   :  { %s714_s13 = smov 0   ;;  %s716_s14 = smov 0  }
   0x4 LB: > { %s481_s15 = sadd.s32 4294967295, %s685_s14   ;;  %s24_s16 = sadd.s32 1, %s681_s13  ;;  %s685_s14 = sphi %s716_s14, %s15_s14   ;;  %s681_s13 = sphi %s714_s13, %s867_s13   ;;  %s677_s12 = sphi %s712_s12, %s866_s12   ;;  %s673_s11 = sphi %s710_s11, %s865_s11   ;;  %s669_s10 = sphi %s708_s10, %s864_s10   ;;  %s665_s9 = sphi %s706_s9, %s863_s9  }
   0x5   : > { %p25_p0 = scmp.ge.s32.totalorder %s24_s16, 2  ;;  %s60_s17 = sadd.s32 1, %s673_s11 }
   0x6   : > { %p67_p1 = scmp.ne.s32.totalorder %s673_s11, %s669_s10  ;;  %p68_p2 = scmp.eq.s32.totalorder %s685_s14, 0 }
   0x7   : > { %s869_s16 = smov (%p25_p0, %s24_s16), 0  ;;  %p73_p4 = scmp.ne.s32.totalorder %s669_s10, %s665_s9 }
   0x8   : > { %p742_p3 = por %p68_p2, %p67_p1  ;;  %s57_s19 = ssub.s32 %s681_s13, %s869_s16 }
   0x9   : > { %p74_p5 = scmp.eq.s32.totalorder %s481_s15, 0  ;;  %p58_p6 = scmp.eq.s32.totalorder %s57_s19, 0 }
   0xa   : > { %p537_p8 = scmp.lt.s32.totalorder %s685_s14, 2  ;;  %s133_s22 = sand.u32 1, %s673_s11  }
   0xb   : > { %p749_p7 = por %p74_p5, %p73_p4  ;;  %s487_s23 = sshll.u32 %s681_s13, 6 }
   0xc   : > { %s755_s21 = scalar_select %p58_p6, %s673_s11, %s60_s17  }
   0xd   : > { %s486_s24 = sshll.u32 %s133_s22, 7  ;;  %s762_s27 = scalar_lea.hbm %s857_s1, %s487_s23 }
   0xe   : > { %s137_s28 = scalar_lea.vmem [#allocation2], %s486_s24  ;;  %p766_p9 = pnand %p537_p8, %p742_p3 }
   0xf   : > { %s143_s29 = sshll.u32 %s137_s28, 4  ;;  %s773_s3 = scalar_lea.sflag [#allocation3], %s133_s22  ;;  %s770_s29 = int_to_ptr.vmem [resolvable:$true] %s143_s29 }
  0x10   : > { %s605_s4 = scalar_lea.hbm %s762_s27, 2048  ;;  %p607_p12 = pneg %p766_p9 }
  0x11   : > { %p606_p11 = scmp.ne.s32.totalorder %s762_s27, %s605_s4  ;;  %s610_s7 = scalar_lea.hbm %s857_s1, 4096 }
  0x12   : > { %p611_p1 = scmp.lt.u32.totalorder %s762_s27, %s857_s1  ;;  %p612_p2 = scmp.lt.u32.totalorder %s610_s7, %s605_s4 }
  0x13   : > { %p608_p13 = pnand %p607_p12, %p606_p11  ;;  %p614_p4 = scmp.lt.u32.totalorder %s605_s4, %s762_s27 }
  0x14   : > { %p613_p3 = por %p612_p2, %p611_p1 }
  0x15   : > { %p609_p0 = pneg %p608_p13 }
  0x16   : > { %p615_p5 = por %p614_p4, %p613_p3 }
  0x18   : > { %p616_p6 = pnand %p615_p5, %p609_p0 }
  0x1a   : > { %619 = shalt.err (!%p616_p6)
}
  0x1b   : > { %s620_s15 = scalar_lea.vmem %s770_s29, 2048  ;;  %s687_s17 = smov [#allocation2]  }
  0x1c   : > { %p621_p8 = scmp.ne.s32.totalorder %s770_s29, %s620_s15  ;;  %s625_s18 = sshll.u32 %s687_s17, 4  ;;  %s626_s18 = int_to_ptr.vmem [resolvable:$false] %s625_s18 }
  0x1d   : > { %s627_s19 = scalar_lea.vmem %s626_s18, 4096  ;;  %p628_p10 = scmp.lt.s32.totalorder %s770_s29, %s626_s18 }
  0x1e   : > { %p623_p11 = pnand %p621_p8, %p607_p12  ;;  %p629_p1 = scmp.lt.s32.totalorder %s627_s19, %s620_s15 }
  0x20   : > { %p624_p13 = pneg %p623_p11  ;;  %p630_p2 = por %p629_p1, %p628_p10 }
  0x22   : > { %p631_p3 = pnand %p630_p2, %p624_p13 }
  0x24   : > { %634 = shalt.err (!%p631_p3)
}
  0x25   : > { %s688_s22 = smov 128   ;;  %s689_s23 = smov 64  }
  0x26   : > { %s690_s24 = smov 4   ;;  %p151_p12 = scmp.lt.s32.totalorder %s685_s14, 3 }
  0x27   : > { %536 = dma.hbm_to_vmem [thread:$0]  (!%p766_p9), %s762_s27, 2048, %s770_s29, %s773_s3, %s688_s22, %s689_s23, %s690_s24  }
  0x28   : > { %p862_p0 = scmp.ge.s32.totalorder %s685_s14, 1 }
  0x2a   : > { %p152_p4 = pnand %p862_p0, %p151_p12 }
  0x2b   : > { %s157_s25 = sand.u32 (!%p152_p4), 1, %s669_s10  }
  0x2c   : > { %155 = sbr.rel (%p152_p4) target bundleno = 301 (0x12d), region = 28  ;;  %s489_s26 = sshll.u32 (!%p152_p4), %s157_s25, 7 }
  0x2d   : > { %s158_s28 = scalar_lea.sflag (!%p152_p4), [#allocation3], %s157_s25  ;;  %s805_s4 = scalar_lea.vmem (!%p152_p4), [#allocation2], %s489_s26 }
  0x33   : > { %660 = dma.done.wait (%p749_p7), %s158_s28, 2048  }
  0x34   : > { %662 = vsyncadd (%p749_p7), %s158_s28, 4294965248  ;;  %v589_v0 = vld [vmem:[%s805_s4 + $0x40] sm:$0xff]   ;;  %v591_v2 = vld [vmem:[%s805_s4 + $0x48] sm:$0xff]   ;;  %p197_p7 = scmp.lt.s32.totalorder %s677_s12, 1 }
  0x35   : > { %v590_v1 = vld [vmem:[%s805_s4] sm:$0xff]   ;;  %509 = vmatprep.subr.bf16.mxu0 %v589_v0  ;;  %v592_v3 = vld [vmem:[%s805_s4 + $0x8] sm:$0xff]   ;;  %v593_v4 = vld [vmem:[%s805_s4 + $0x50] sm:$0xff]  }
  0x36   : > { %510 = vmatpush3.bf16.msra.mxu0 %v590_v1  ;;  %v594_v5 = vld [vmem:[%s805_s4 + $0x10] sm:$0xff]   ;;  %v595_v6 = vld [vmem:[%s805_s4 + $0x58] sm:$0xff]   ;;  %v597_v8 = vld [vmem:[%s805_s4 + $0x60] sm:$0xff]   ;;  %s871_s12 = smov (!%p197_p7, %s677_s12), 1 }
  0x37   : > { %511 = vmatprep.subr.bf16.mxu0 %v591_v2  ;;  %v596_v7 = vld [vmem:[%s805_s4 + $0x18] sm:$0xff]   ;;  %v598_v9 = vld [vmem:[%s805_s4 + $0x20] sm:$0xff]   ;;  %v599_v10 = vld [vmem:[%s805_s4 + $0x68] sm:$0xff]   ;;  %s490_s3 = sshll.u32 %s871_s12, 3 }
  0x38   : > { %v205_v11 = vld [vmem:[%s856_s0 + $0x8] sm:$0xff]  ;;  %v601_v14 = vld [vmem:[%s805_s4 + $0x70] sm:$0xff]   ;;  %v603_v16 = vld [vmem:[%s805_s4 + $0x78] sm:$0xff]   ;;  %s202_s7 = scalar_lea.vmem %s858_s2, %s490_s3 }
  0x39   : > { %v207_v12 = vpack.c.bf16 %v205_v11, %v205_v11  ;;  %v600_v13 = vld [vmem:[%s805_s4 + $0x28] sm:$0xff]   ;;  %v602_v15 = vld [vmem:[%s805_s4 + $0x30] sm:$0xff]   ;;  %v604_v17 = vld [vmem:[%s805_s4 + $0x38] sm:$0xff]  }
  0x3a   : > { %512 = vmatpush3.bf16.msra.mxu0 %v592_v3  ;;  %v204_v18 = vld [vmem:[%s856_s0] sm:$0xff] }
  0x3b   : > { %513 = vmatprep.subr.bf16.mxu0 %v593_v4  ;;  %368 = vmatprep.mubr.bf16.mxu0 %v207_v12  ;;  %v206_v19 = vpack.c.bf16 %v204_v18, %v204_v18 }
  0x3e   : > { %514 = vmatpush3.bf16.msra.mxu0 %v594_v5 }
  0x3f   : > { %515 = vmatprep.subr.bf16.mxu0 %v595_v6 }
  0x42   : > { %516 = vmatpush3.bf16.msra.mxu0 %v596_v7 }
  0x43   : > { %517 = vmatprep.subr.bf16.mxu0 %v597_v8 }
  0x46   : > { %518 = vmatpush3.bf16.msra.mxu0 %v598_v9 }
  0x47   : > { %519 = vmatprep.subr.bf16.mxu0 %v599_v10 }
  0x4a   : > { %520 = vmatpush3.bf16.msra.mxu0 %v600_v13 }
  0x4b   : > { %521 = vmatprep.subr.bf16.mxu0 %v601_v14 }
  0x4e   : > { %522 = vmatpush3.bf16.msra.mxu0 %v602_v15 }
  0x4f   : > { %523 = vmatprep.subr.bf16.mxu0 %v603_v16 }
  0x52   : > { %524 = vmatpush3.bf16.msra.mxu0 %v604_v17 }
  0x55   : > { %369 = vmatmul.mubr.bf16.vlgmr.msra.gmra.mrb[0].mxu0 %v206_v19 }
 0x128   : > { %v525_v20 = vpop.f32.mrb[0].mxu0 }
 0x129   : > { %v526_v21 = vpop.f32.mrb[1].mxu0 }
 0x12a   : > { %v527_v22 = vadd.f32 %v526_v21, %v525_v20  ;;  %v528_v23 = vpop.f32.mrb[2].mxu0 }
 0x12b   : > { %v529_v24 = vpop.f32.mrb[3].mxu0 }
 0x12c   : > { %376 = vst [vmem:[%s202_s7] sm:$0xff] %v527_v22 }
 0x12d PF: > { %s15_s14 = sadd.s32 1, %s685_s14   ;;  %s863_s9 = smov %s669_s10 }
 0x12e   : > { %p12_p9 = scmp.ge.s32.totalorder %s15_s14, 4   ;;  %s864_s10 = smov %s673_s11 }
 0x12f   : > { %s865_s11 = smov %s755_s21  ;;  %s866_s12 = smov %s681_s13 }
 0x130   : > { %s867_s13 = smov %s869_s16  ;;  %14 = sbr.rel (!%p12_p9) target bundleno = 4 (0x4), region = 71 }
 0x137   :  { %404 = vsyncpa [#allocation3], 1 }
 0x138   :  { %406 = vsyncpa [#allocation3 + $0x1], 1 }

</bundles_post_ra>
